<compile_context>
chip_gen: v5e
topology: v5e:2x2
jax: 0.10.0
libtpu: 0.0.40
codegen_flags: <defaults>
</compile_context>

<pallas_src>
from functools import partial

import jax
import jax.numpy as jnp
import numpy as np
from jax import lax
from jax.experimental import pallas as pl
from jax.experimental.pallas import tpu as pltpu


def _pick_batch_block(batch, h_dim, enc_h):
    """Pick how many batch elements to process per grid step.

    A sub-batch block is only used when the resulting lane widths stay
    128-aligned (BlockSpec divisibility); otherwise take the whole batch in a
    single fat step.
    """
    for blk in (32, 16, 8):
        if batch % blk == 0 and (blk * h_dim) % 128 == 0 and (blk * enc_h) % 128 == 0:
            return blk
    return batch


def _make_attention_kernel(batch_block, h_dim, bidirectional):
    ndir = 2 if bidirectional else 1
    enc_h = ndir * h_dim

    def kernel(e_ref, d_ref, o_ref):
        # e_ref: (S, batch_block * ndir * H)  seq-major encoder block
        # d_ref: (T, batch_block * H)         seq-major decoder block
        # o_ref: (T, batch_block * H)         seq-major context block
        ctxs = []
        for b in range(batch_block):  # static unroll over the batch block
            base = b * enc_h
            if bidirectional:
                # sum the forward / backward direction halves (torch .view(...,2,-1).sum(2))
                e_b = e_ref[:, base:base + h_dim] + e_ref[:, base + h_dim:base + 2 * h_dim]
            else:
                e_b = e_ref[:, base:base + h_dim]                    # (S, H)
            d_b = d_ref[:, b * h_dim:(b + 1) * h_dim]                # (T, H)

            # scores in (T, S) orientation: contract H vs H, no operand transposes.
            s = lax.dot_general(
                d_b, e_b,
                dimension_numbers=(((1,), (1,)), ((), ())),
                preferred_element_type=jnp.float32)                  # (T, S) f32

            # Unstabilized softmax over src (matches attn.exp()/attn.exp().sum(dim=1)).
            ex = jnp.exp(s)
            denom = jnp.sum(ex, axis=-1, keepdims=True)              # (T, 1)
            a = ex * pl.reciprocal(denom, approx=True)               # (T, S)

            # context = attn @ E  -> (T, H); MXU consumes operands in input dtype.
            ctx = jnp.dot(a.astype(e_b.dtype), e_b,
                          preferred_element_type=jnp.float32)        # (T, H) f32
            ctxs.append(ctx.astype(o_ref.dtype))

        # Single lane-dense store of the whole (T, batch_block*H) output tile.
        if batch_block == 1:
            o_ref[...] = ctxs[0]
        else:
            o_ref[...] = jnp.concatenate(ctxs, axis=-1)

    return kernel


def attention_forward(in_e, out_e, out_d, *, bidirectional=True, batch_block=None):
    """Mirrors Attention.forward: returns context of shape (trg_len, batch, h_dim)."""
    del in_e  # unused by the torch forward path
    S, B, EH = out_e.shape
    T, B2, H = out_d.shape
    assert B == B2
    ndir = 2 if bidirectional else 1
    assert EH == ndir * H

    if batch_block is None:
        batch_block = _pick_batch_block(B, H, EH)
    assert B % batch_block == 0
    grid = (B // batch_block,)

    # Free contiguous reshapes (no HBM transpose): keep seq-major layout and merge
    # (batch, feature) into one lane axis so kernel tiles are 2-D and lane-dense.
    e2 = out_e.reshape(S, B * EH)
    d2 = out_d.reshape(T, B * H)

    kernel = _make_attention_kernel(batch_block, H, bidirectional)

    # TODO(synk): for very long src sequences, add an S-reduction grid axis
    # ("arbitrary") with VMEM num/den accumulators to cap VMEM (v7x 64 MiB).
    out = pl.pallas_call(
        kernel,
        out_shape=jax.ShapeDtypeStruct((T, B * H), out_d.dtype),
        grid=grid,
        in_specs=[
            pl.BlockSpec((S, batch_block * EH), lambda b: (0, b)),
            pl.BlockSpec((T, batch_block * H), lambda b: (0, b)),
        ],
        out_specs=pl.BlockSpec((T, batch_block * H), lambda b: (0, b)),
        compiler_params=pltpu.CompilerParams(dimension_semantics=("parallel",)),
    )(e2, d2)

    return out.reshape(T, B, H)  # already seq-major (trg_len, batch, h_dim)


def _reference_forward(out_e, out_d, bidirectional=True):
    """Pure-JAX reference matching the PyTorch code exactly (f32, exact divide)."""
    S, B, EH = out_e.shape
    T, _, H = out_d.shape
    if bidirectional:
        e = out_e.reshape(S, B, 2, H).sum(2)                 # (S, B, H)
    else:
        e = out_e
    E = e.transpose(1, 0, 2)                                 # (B, S, H)
    D = out_d.transpose(1, 0, 2)                             # (B, T, H)
    attn = jnp.einsum('bsh,bth->bst', E, D)                  # (B, S, T)
    attn = jnp.exp(attn) / jnp.exp(attn).sum(axis=1, keepdims=True)
    attn = attn.transpose(0, 2, 1)                           # (B, T, S)
    ctx = jnp.einsum('bts,bsh->bth', attn, E)                # (B, T, H)
    return ctx.transpose(1, 0, 2)                            # (T, B, H)


if __name__ == "__main__":
    key = jax.random.PRNGKey(0)
    k1, k2, k3 = jax.random.split(key, 3)

    h_dim = 32
    batch = 2
    src_len = 8
    trg_len = 8
    bidirectional = True
    ndir = 2 if bidirectional else 1

    # Deterministic synthetic inputs (RNN-style seq-major layout).
    in_e = jax.random.randint(k1, (src_len, batch), 0, 10)                         # unused by forward
    out_e = jax.random.normal(k2, (src_len, batch, ndir * h_dim), jnp.float32) * 0.5
    out_d = jax.random.normal(k3, (trg_len, batch, h_dim), jnp.float32) * 0.5

    context = attention_forward(in_e, out_e, out_d, bidirectional=bidirectional)
    context = jax.block_until_ready(context)

    ref = _reference_forward(out_e, out_d, bidirectional=bidirectional)
    assert context.shape == (trg_len, batch, h_dim)
    # Tolerance loosened slightly: kernel uses the EUP approximate reciprocal for
    # the softmax denominator (exact divide in the reference).
    np.testing.assert_allclose(np.asarray(context), np.asarray(ref), rtol=1e-2, atol=1e-2)

    print("KERNEL_OK")
</pallas_src>

<mosaic_0001>
module attributes {stable_mosaic.version = 11 : i64} {
  func.func @kernel(%arg0: i32, %arg1: memref<8x128xf32, #tpu.memory_space<vmem>>, %arg2: memref<8x64xf32, #tpu.memory_space<vmem>>, %arg3: memref<8x64xf32, #tpu.memory_space<vmem>>) attributes {dimension_semantics = [#tpu.dimension_semantics<parallel>], iteration_bounds = array<i64: 1>, scalar_prefetch = 0 : i64, scratch_operands = 0 : i64, tpu.core_type = #tpu.core_type<tc>, window_params = [{transform_indices = @transform_0, window_bounds = array<i64: 8, 128>}, {transform_indices = @transform_1, window_bounds = array<i64: 8, 64>}, {transform_indices = @transform_2, window_bounds = array<i64: 8, 64>}]} {
    %c0 = arith.constant 0 : index
    %c0_0 = arith.constant 0 : index
    %0 = vector.load %arg1[%c0, %c0_0] : memref<8x128xf32, #tpu.memory_space<vmem>>, vector<8x32xf32>
    %c0_1 = arith.constant 0 : index
    %c32 = arith.constant 32 : index
    %1 = vector.load %arg1[%c0_1, %c32] : memref<8x128xf32, #tpu.memory_space<vmem>>, vector<8x32xf32>
    %2 = arith.addf %0, %1 : vector<8x32xf32>
    %c0_2 = arith.constant 0 : index
    %c0_3 = arith.constant 0 : index
    %3 = vector.load %arg2[%c0_2, %c0_3] : memref<8x64xf32, #tpu.memory_space<vmem>>, vector<8x32xf32>
    %cst = arith.constant dense<0.000000e+00> : vector<8x8xf32>
    %4 = tpu.matmul %3, %2, %cst {dimension_numbers = #tpu.dot_dimension_numbers<[1], [1], [0], [0], [0, 0, 1, 0], [], []>} : vector<8x32xf32>, vector<8x32xf32>, vector<8x8xf32> -> vector<8x8xf32>
    %5 = math.exp %4 : vector<8x8xf32>
    %cst_4 = arith.constant dense<0.000000e+00> : vector<8xf32>
    %6 = vector.multi_reduction <add>, %5, %cst_4 [1] : vector<8x8xf32> to vector<8xf32>
    %7 = vector.shape_cast %6 : vector<8xf32> to vector<8x1xf32>
    %8 = tpu.reciprocal %7 {approx = true} : vector<8x1xf32> -> vector<8x1xf32>
    %9 = vector.broadcast %8 : vector<8x1xf32> to vector<8x8xf32>
    %10 = arith.mulf %5, %9 : vector<8x8xf32>
    %cst_5 = arith.constant dense<0.000000e+00> : vector<8x32xf32>
    %11 = tpu.matmul %10, %2, %cst_5 {dimension_numbers = #tpu.dot_dimension_numbers<[1], [0], [0], [1], [0, 0, 1, 1], [], []>} : vector<8x8xf32>, vector<8x32xf32>, vector<8x32xf32> -> vector<8x32xf32>
    %c0_6 = arith.constant 0 : index
    %c64 = arith.constant 64 : index
    %12 = vector.load %arg1[%c0_6, %c64] : memref<8x128xf32, #tpu.memory_space<vmem>>, vector<8x32xf32>
    %c0_7 = arith.constant 0 : index
    %c96 = arith.constant 96 : index
    %13 = vector.load %arg1[%c0_7, %c96] : memref<8x128xf32, #tpu.memory_space<vmem>>, vector<8x32xf32>
    %14 = arith.addf %12, %13 : vector<8x32xf32>
    %c0_8 = arith.constant 0 : index
    %c32_9 = arith.constant 32 : index
    %15 = vector.load %arg2[%c0_8, %c32_9] : memref<8x64xf32, #tpu.memory_space<vmem>>, vector<8x32xf32>
    %cst_10 = arith.constant dense<0.000000e+00> : vector<8x8xf32>
    %16 = tpu.matmul %15, %14, %cst_10 {dimension_numbers = #tpu.dot_dimension_numbers<[1], [1], [0], [0], [0, 0, 1, 0], [], []>} : vector<8x32xf32>, vector<8x32xf32>, vector<8x8xf32> -> vector<8x8xf32>
    %17 = math.exp %16 : vector<8x8xf32>
    %cst_11 = arith.constant dense<0.000000e+00> : vector<8xf32>
    %18 = vector.multi_reduction <add>, %17, %cst_11 [1] : vector<8x8xf32> to vector<8xf32>
    %19 = vector.shape_cast %18 : vector<8xf32> to vector<8x1xf32>
    %20 = tpu.reciprocal %19 {approx = true} : vector<8x1xf32> -> vector<8x1xf32>
    %21 = vector.broadcast %20 : vector<8x1xf32> to vector<8x8xf32>
    %22 = arith.mulf %17, %21 : vector<8x8xf32>
    %cst_12 = arith.constant dense<0.000000e+00> : vector<8x32xf32>
    %23 = tpu.matmul %22, %14, %cst_12 {dimension_numbers = #tpu.dot_dimension_numbers<[1], [0], [0], [1], [0, 0, 1, 1], [], []>} : vector<8x8xf32>, vector<8x32xf32>, vector<8x32xf32> -> vector<8x32xf32>
    %24 = tpu.concatenate %11, %23 in 1 : vector<8x32xf32>, vector<8x32xf32> -> vector<8x64xf32>
    %c0_13 = arith.constant 0 : index
    %c0_14 = arith.constant 0 : index
    %25 = vector.load %arg3[%c0_13, %c0_14] : memref<8x64xf32, #tpu.memory_space<vmem>>, vector<8x64xf32>
    tpu.vector_store %arg3[%c0_13, %c0_14], %24 {strides = array<i32>} : memref<8x64xf32, #tpu.memory_space<vmem>>, vector<8x64xf32>,
    return
  }
  func.func @transform_0(%arg0: i32) -> (i32, i32) {
    %c0_i32 = arith.constant 0 : i32
    %c0_i32_0 = arith.constant 0 : i32
    return %c0_i32, %arg0 : i32, i32
  }
  func.func @transform_1(%arg0: i32) -> (i32, i32) {
    %c0_i32 = arith.constant 0 : i32
    %c0_i32_0 = arith.constant 0 : i32
    return %c0_i32, %arg0 : i32, i32
  }
  func.func @transform_2(%arg0: i32) -> (i32, i32) {
    %c0_i32 = arith.constant 0 : i32
    %c0_i32_0 = arith.constant 0 : i32
    return %c0_i32, %arg0 : i32, i32
  }
}

</mosaic_0001>

<bundles_post_ra>
// kernel: tpu_custom_call.1
= control target key start
LH: loop header
LB: loop body
LE: loop exit
PB: predicated region body
PF: predicated region fallthrough
CT: control target
= control target key end

     0   :  { %7 = vsyncpa [#allocation3], 0  ;;  %s326_s0 = inlined_call_operand.hbm [shape: f32[8,128], index: 0, kind: input, shape index: {}]   ;;  %s327_s1 = inlined_call_operand.hbm [shape: f32[8,64], index: 1, kind: input, shape index: {}]   ;;  %s328_s2 = inlined_call_operand.hbm [shape: f32[8,64], index: 2, kind: output, shape index: {}]  }
   0x1   :  { %8 = vsyncpa [#allocation6], 0 }
   0x2   :  { %9 = vsyncpa [#allocation4], 0  ;;  %s15_s11 = sshll.u32 %s326_s0, 4  ;;  %s287_s12 = smov [#allocation2]   ;;  %s16_s11 = int_to_ptr.hbm [resolvable:$true] %s15_s11 }
   0x3   :  { %s17_s13 = sshll.u32 %s287_s12, 4  ;;  %s26_s16 = sshll.u32 %s327_s1, 4  ;;  %s18_s13 = int_to_ptr.vmem [resolvable:$true] %s17_s13  ;;  %s27_s16 = int_to_ptr.hbm [resolvable:$true] %s26_s16 }
   0x4   :  { %20 = dma.hbm_to_vmem [thread:$0]  %s16_s11, 128, %s18_s13, [#allocation3]  }
   0x5   :  { %s288_s17 = smov [#allocation5]  }
   0x6   :  { %s28_s18 = sshll.u32 %s288_s17, 4  ;;  %s29_s18 = int_to_ptr.vmem [resolvable:$true] %s28_s18 }
   0x7   :  { %31 = dma.hbm_to_vmem [thread:$0]  %s27_s16, 128, %s29_s18, [#allocation6]  }
   0x8   :  { %281 = dma.done.wait [#allocation3], 128  }
   0x9   :  { %282 = vsyncadd [#allocation3], 4294967168 }
   0xa   :  { %283 = dma.done.wait [#allocation6], 128  }
   0xb   :  { %284 = vsyncadd [#allocation6], 4294967168  ;;  %v40_v0 = vld [vmem:[#allocation2] sm:$0xff]  ;;  %s289_s0 = smov 96   ;;  %v46_v1 = vld [vmem:[#allocation5] sm:$0xff]  ;;  %vm47_vm0 = vcmask 261120  }
   0xc   :  { %42 = vrot.lane.b32.xlu0 %v40_v0, %s289_s0  ;;  %105 = vrot.lane.b32.xlu1 %v46_v1, %s289_s0  ;;  %s290_s19 = smov 64   ;;  %vm76_vm1 = vcmask 64512   ;;  %s291_s1 = smov 32   ;;  %vm169_vm2 = vcmask 523264  }
   0xd   :  { %s292_s20 = smov [#allocation7]   ;;  %s178_s24 = sshll.u32 %s328_s2, 4  ;;  %s179_s24 = int_to_ptr.hbm [resolvable:$true] %s178_s24 }
   0xe   :  { %s176_s21 = sshll.u32 %s292_s20, 4  ;;  %s177_s21 = int_to_ptr.vmem [resolvable:$true] %s176_s21 }
  0x7e   :  { %v43_v2 = vpop.permute.xlu0 %42  ;;  %v106_v5 = vpop.permute.xlu1 %105 }
  0x7f   :  { %v45_v3 = vadd.f32 %v43_v2, %v40_v0 }
  0x81   :  { %107 = vrot.lane.b32.xlu0 %v45_v3, %s290_s19  ;;  %189 = vmatpush.xpose.msk.msra.mxu0 %vm47_vm0, %v45_v3 }
  0x82   :  { %100 = vmatpush.msra.mxu1 %v45_v3 }
  0x84   :  { %190 = vmatmul.msk.f32.vlgmr.msra.gmra.mxu0 %vm47_vm0, %v46_v1 }
  0xf3   :  { %v108_v4 = vpop.permute.xlu0 %107 }
  0xf4   :  { %192 = vmatpush.xpose.msk.msra.mxu2 %vm47_vm0, %v108_v4  ;;  %159 = vmatpush.msra.mxu3 %v108_v4 }
  0xf7   :  { %193 = vmatmul.msk.f32.vlgmr.msra.gmra.mxu2 %vm47_vm0, %v106_v5 }
 0x101   :  { %v71_v6 = vpop.f32.mrf.mxu0 }
 0x102   :  { %v74_v7 = vmul.f32 1.442695, %v71_v6 }
 0x104   :  { %201 = vpow2.f32 %v74_v7 }
 0x10a   :  { %v202_v8 = vpop.eup %201 }
 0x10b   :  { %v77_v9 = vsel %vm76_vm1, %v202_v8, 0.0 }
 0x10c   :  { %78 = vadd.xlane.f32.xlu2 %v77_v9 }
 0x17a   :  { %v130_v10 = vpop.f32.mrf.mxu2 }
 0x17b   :  { %v133_v11 = vmul.f32 1.442695, %v130_v10 }
 0x17d   :  { %203 = vpow2.f32 %v133_v11 }
 0x17f   :  { %v79_v12 = vpop.xlane.xlu2 %78 }
 0x180   :  { %205 = vrcp.f32 %v79_v12 }
 0x183   :  { %v204_v13 = vpop.eup %203 }
 0x184   :  { %v135_v14 = vsel %vm76_vm1, %v204_v13, 0.0 }
 0x185   :  { %136 = vadd.xlane.f32.xlu1 %v135_v14 }
 0x186   :  { %v206_v15 = vpop.eup %205 }
 0x187   :  { %v81_v16 = vmul.f32 %v206_v15, %v202_v8 }
 0x189   :  { %191 = vmatmul.msk.f32.vlgmr.msra.gmra.mxu1 %vm76_vm1, %v81_v16 }
 0x1f8   :  { %v137_v17 = vpop.xlane.xlu1 %136 }
 0x1f9   :  { %207 = vrcp.f32 %v137_v17 }
 0x1ff   :  { %v208_v18 = vpop.eup %207 }
 0x200   :  { %v139_v19 = vmul.f32 %v208_v18, %v204_v13 }
 0x202   :  { %194 = vmatmul.msk.f32.vlgmr.msra.gmra.mxu3 %vm76_vm1, %v139_v19 }
 0x206   :  { %v102_v21 = vpop.f32.mrf.mxu1 }
 0x285   :  { %v161_v20 = vpop.f32.mrf.mxu3 }
 0x286   :  { %165 = vrot.lane.b32.xlu2 %v161_v20, %s291_s1 }
 0x2e0   :  { %v166_v22 = vpop.permute.xlu2 %165 }
 0x2e1   :  { %v168_v23 = vsel %vm47_vm0, %v102_v21, %v166_v22 }
 0x2e2   :  { %170 = vst.msk [vmem:[#allocation7] sm:$0xff] %vm169_vm2, %v168_v23 }
 0x2e3   :  { %181 = dma.vmem_to_hbm [thread:$0]  %s177_s21, 128, %s179_s24, [#allocation4]  }
 0x2e4   :  { %285 = dma.done.wait [#allocation4], 128  }
 0x2e5   :  { %286 = vsyncadd [#allocation4], 4294967168 }
 0x2e6   :  { %186 = vsyncpa [#allocation3], 1 }
 0x2e7   :  { %187 = vsyncpa [#allocation6], 1 }
 0x2e8   :  { %188 = vsyncpa [#allocation4], 1 }

</bundles_post_ra>
